<compile_context>
chip_gen: v7x
topology: tpu7x:2x2x1
jax: 0.10.0
libtpu: 0.0.40
codegen_flags: <defaults>
</compile_context>

<pallas_src>
import jax
import jax.numpy as jnp
from jax.experimental import pallas as pl
from jax.experimental.pallas import tpu as pltpu

F_IN = 13        # raw feature count
F_PAD = 16       # zero-padded K for layer 1 (bf16 sublane-aligned; keeps x traffic small)
H1, H2, H3 = 128, 256, 256


def _round_up(x, m):
    return ((x + m - 1) // m) * m


def housing_nn_kernel(x_ref, w1_ref, b1_ref, w2_ref, b2_ref,
                      w3_ref, b3_ref, w4_ref, b4_ref, o_ref):
    # hidden1 + ReLU   (bf16 operands, f32 MXU accumulation)
    h = jnp.dot(x_ref[...], w1_ref[...],
                preferred_element_type=jnp.float32) + b1_ref[...]
    h = jnp.maximum(h, 0.0).astype(jnp.bfloat16)
    # dropout(p=0.05) -> identity in eval/inference mode
    # hidden2 + ReLU
    h = jnp.dot(h, w2_ref[...],
                preferred_element_type=jnp.float32) + b2_ref[...]
    h = jnp.maximum(h, 0.0).astype(jnp.bfloat16)
    # hidden3 + ReLU
    h = jnp.dot(h, w3_ref[...],
                preferred_element_type=jnp.float32) + b3_ref[...]
    h = jnp.maximum(h, 0.0)
    # out (256 -> 1): keep the N=1 projection off the MXU — VPU mul + lane reduce
    o = jnp.sum(h * w4_ref[...], axis=-1, keepdims=True) + b4_ref[...]
    o_ref[...] = o.astype(o_ref.dtype)


def housing_nn_forward(x, params, *, max_tile_b=1024):
    """x: (B, 13) float32. params: transposed f32 weights / row biases (see init_params)."""
    B = x.shape[0]

    # Batch tile: multiple of 8 sublanes, big enough to amortize per-step
    # overhead, capped so VMEM stays comfortable and small batches don't
    # over-pad.
    TB = min(max_tile_b, _round_up(B, 8))
    B_pad = _round_up(B, TB)
    n_tiles = B_pad // TB

    # --- wrapper-side padding / dtype prep (done once, outside the kernel) ---
    x_p = jnp.pad(x, ((0, B_pad - B), (0, F_PAD - F_IN))).astype(jnp.bfloat16)
    w1_p = jnp.pad(params["w1"], ((0, F_PAD - F_IN), (0, 0))).astype(jnp.bfloat16)
    w2_p = params["w2"].astype(jnp.bfloat16)
    w3_p = params["w3"].astype(jnp.bfloat16)
    w4_row = params["w4"].T.astype(jnp.float32)           # (1, 256)
    b1 = params["b1"].astype(jnp.float32)                  # (1, 128)
    b2 = params["b2"].astype(jnp.float32)                  # (1, 256)
    b3 = params["b3"].astype(jnp.float32)                  # (1, 256)
    b4 = params["b4"].astype(jnp.float32)                  # (1, 1)

    const = lambda shape: pl.BlockSpec(shape, lambda i: (0, 0))

    flops = 2 * B_pad * (F_PAD * H1 + H1 * H2 + H2 * H3 + H3)
    bytes_accessed = (B_pad * F_PAD * 2 + B_pad * 4
                      + (F_PAD * H1 + H1 * H2 + H2 * H3) * 2
                      + (H1 + H2 + H3 + H3 + 1) * 4)

    out = pl.pallas_call(
        housing_nn_kernel,
        out_shape=jax.ShapeDtypeStruct((B_pad, 1), jnp.float32),
        grid=(n_tiles,),
        in_specs=[
            pl.BlockSpec((TB, F_PAD), lambda i: (i, 0)),   # x: tiled over batch
            const(w1_p.shape), const(b1.shape),
            const(w2_p.shape), const(b2.shape),
            const(w3_p.shape), const(b3.shape),
            const(w4_row.shape), const(b4.shape),
        ],
        out_specs=pl.BlockSpec((TB, 1), lambda i: (i, 0)),
        compiler_params=pltpu.CompilerParams(
            dimension_semantics=("parallel",)),
        cost_estimate=pl.CostEstimate(
            flops=flops, transcendentals=0, bytes_accessed=bytes_accessed),
    )(x_p, w1_p, b1, w2_p, b2, w3_p, b3, w4_row, b4)

    # drop batch padding, mirror x.squeeze(-1)
    return out[:B, 0]


def init_params(key):
    """Deterministic init mimicking PyTorch nn.Linear default (U[-1/sqrt(fan_in), +])."""
    dims = [(F_IN, H1), (H1, H2), (H2, H3), (H3, 1)]
    params = {}
    for idx, (fan_in, fan_out) in enumerate(dims, start=1):
        key, kw, kb = jax.random.split(key, 3)
        bound = 1.0 / jnp.sqrt(fan_in)
        # stored transposed: (in, out)
        params[f"w{idx}"] = jax.random.uniform(
            kw, (fan_in, fan_out), jnp.float32, -bound, bound)
        params[f"b{idx}"] = jax.random.uniform(
            kb, (1, fan_out), jnp.float32, -bound, bound)
    return params


if __name__ == "__main__":
    key = jax.random.PRNGKey(0)
    key, kx = jax.random.split(key)
    B = 8
    x = jax.random.normal(kx, (B, F_IN), jnp.float32)
    params = init_params(key)

    # TODO(synk): nn.Dropout(p=0.05) is treated as eval-mode identity (no RNG mask).
    y = housing_nn_forward(x, params)
    y = jax.block_until_ready(y)
    assert y.shape == (B,) and y.dtype == jnp.float32

    # f32 reference in plain JAX (kernel uses bf16 matmul inputs -> looser tolerance)
    h = jnp.maximum(x @ params["w1"] + params["b1"], 0.0)
    h = jnp.maximum(h @ params["w2"] + params["b2"], 0.0)
    h = jnp.maximum(h @ params["w3"] + params["b3"], 0.0)
    ref = (h @ params["w4"] + params["b4"])[:, 0]
    assert jnp.allclose(y, ref, atol=5e-2, rtol=5e-2), (y, ref)

    print("KERNEL_OK")
</pallas_src>

<mosaic_0001>
module attributes {stable_mosaic.version = 11 : i64} {
  func.func @housing_nn_kernel(%arg0: i32, %arg1: memref<8x16xbf16, #tpu.memory_space<vmem>>, %arg2: memref<16x128xbf16, #tpu.memory_space<vmem>>, %arg3: memref<1x128xf32, #tpu.memory_space<vmem>>, %arg4: memref<128x256xbf16, #tpu.memory_space<vmem>>, %arg5: memref<1x256xf32, #tpu.memory_space<vmem>>, %arg6: memref<256x256xbf16, #tpu.memory_space<vmem>>, %arg7: memref<1x256xf32, #tpu.memory_space<vmem>>, %arg8: memref<1x256xf32, #tpu.memory_space<vmem>>, %arg9: memref<1x1xf32, #tpu.memory_space<vmem>>, %arg10: memref<8x1xf32, #tpu.memory_space<vmem>>) attributes {dimension_semantics = [#tpu.dimension_semantics<parallel>], iteration_bounds = array<i64: 1>, scalar_prefetch = 0 : i64, scratch_operands = 0 : i64, tpu.core_type = #tpu.core_type<tc>, window_params = [{transform_indices = @transform_0, window_bounds = array<i64: 8, 16>}, {pipeline_mode = #tpu.pipeline_mode<synchronous>, transform_indices = @transform_1, window_bounds = array<i64: 16, 128>}, {pipeline_mode = #tpu.pipeline_mode<synchronous>, transform_indices = @transform_2, window_bounds = array<i64: 1, 128>}, {pipeline_mode = #tpu.pipeline_mode<synchronous>, transform_indices = @transform_3, window_bounds = array<i64: 128, 256>}, {pipeline_mode = #tpu.pipeline_mode<synchronous>, transform_indices = @transform_4, window_bounds = array<i64: 1, 256>}, {pipeline_mode = #tpu.pipeline_mode<synchronous>, transform_indices = @transform_5, window_bounds = array<i64: 256, 256>}, {pipeline_mode = #tpu.pipeline_mode<synchronous>, transform_indices = @transform_6, window_bounds = array<i64: 1, 256>}, {pipeline_mode = #tpu.pipeline_mode<synchronous>, transform_indices = @transform_7, window_bounds = array<i64: 1, 256>}, {pipeline_mode = #tpu.pipeline_mode<synchronous>, transform_indices = @transform_8, window_bounds = array<i64: 1, 1>}, {transform_indices = @transform_9, window_bounds = array<i64: 8, 1>}]} {
    %c0 = arith.constant 0 : index
    %c0_0 = arith.constant 0 : index
    %0 = vector.load %arg1[%c0, %c0_0] : memref<8x16xbf16, #tpu.memory_space<vmem>>, vector<8x16xbf16>
    %c0_1 = arith.constant 0 : index
    %c0_2 = arith.constant 0 : index
    %1 = vector.load %arg2[%c0_1, %c0_2] : memref<16x128xbf16, #tpu.memory_space<vmem>>, vector<16x128xbf16>
    %cst = arith.constant dense<0.000000e+00> : vector<8x128xf32>
    %2 = tpu.matmul %0, %1, %cst {dimension_numbers = #tpu.dot_dimension_numbers<[1], [0], [0], [1], [0, 0, 1, 1], [], []>} : vector<8x16xbf16>, vector<16x128xbf16>, vector<8x128xf32> -> vector<8x128xf32>
    %c0_3 = arith.constant 0 : index
    %c0_4 = arith.constant 0 : index
    %3 = vector.load %arg3[%c0_3, %c0_4] : memref<1x128xf32, #tpu.memory_space<vmem>>, vector<1x128xf32>
    %4 = vector.broadcast %3 : vector<1x128xf32> to vector<8x128xf32>
    %5 = arith.addf %2, %4 : vector<8x128xf32>
    %cst_5 = arith.constant 0.000000e+00 : f32
    %6 = vector.broadcast %cst_5 : f32 to vector<8x128xf32>
    %7 = arith.maximumf %5, %6 : vector<8x128xf32>
    %8 = arith.truncf %7 : vector<8x128xf32> to vector<8x128xbf16>
    %c0_6 = arith.constant 0 : index
    %c0_7 = arith.constant 0 : index
    %9 = vector.load %arg4[%c0_6, %c0_7] : memref<128x256xbf16, #tpu.memory_space<vmem>>, vector<128x256xbf16>
    %cst_8 = arith.constant dense<0.000000e+00> : vector<8x256xf32>
    %10 = tpu.matmul %8, %9, %cst_8 {dimension_numbers = #tpu.dot_dimension_numbers<[1], [0], [0], [1], [0, 0, 1, 1], [], []>} : vector<8x128xbf16>, vector<128x256xbf16>, vector<8x256xf32> -> vector<8x256xf32>
    %c0_9 = arith.constant 0 : index
    %c0_10 = arith.constant 0 : index
    %11 = vector.load %arg5[%c0_9, %c0_10] : memref<1x256xf32, #tpu.memory_space<vmem>>, vector<1x256xf32>
    %12 = vector.broadcast %11 : vector<1x256xf32> to vector<8x256xf32>
    %13 = arith.addf %10, %12 : vector<8x256xf32>
    %cst_11 = arith.constant 0.000000e+00 : f32
    %14 = vector.broadcast %cst_11 : f32 to vector<8x256xf32>
    %15 = arith.maximumf %13, %14 : vector<8x256xf32>
    %16 = arith.truncf %15 : vector<8x256xf32> to vector<8x256xbf16>
    %c0_12 = arith.constant 0 : index
    %c0_13 = arith.constant 0 : index
    %17 = vector.load %arg6[%c0_12, %c0_13] : memref<256x256xbf16, #tpu.memory_space<vmem>>, vector<256x256xbf16>
    %cst_14 = arith.constant dense<0.000000e+00> : vector<8x256xf32>
    %18 = tpu.matmul %16, %17, %cst_14 {dimension_numbers = #tpu.dot_dimension_numbers<[1], [0], [0], [1], [0, 0, 1, 1], [], []>} : vector<8x256xbf16>, vector<256x256xbf16>, vector<8x256xf32> -> vector<8x256xf32>
    %c0_15 = arith.constant 0 : index
    %c0_16 = arith.constant 0 : index
    %19 = vector.load %arg7[%c0_15, %c0_16] : memref<1x256xf32, #tpu.memory_space<vmem>>, vector<1x256xf32>
    %20 = vector.broadcast %19 : vector<1x256xf32> to vector<8x256xf32>
    %21 = arith.addf %18, %20 : vector<8x256xf32>
    %cst_17 = arith.constant 0.000000e+00 : f32
    %22 = vector.broadcast %cst_17 : f32 to vector<8x256xf32>
    %23 = arith.maximumf %21, %22 : vector<8x256xf32>
    %c0_18 = arith.constant 0 : index
    %c0_19 = arith.constant 0 : index
    %24 = vector.load %arg8[%c0_18, %c0_19] : memref<1x256xf32, #tpu.memory_space<vmem>>, vector<1x256xf32>
    %25 = vector.broadcast %24 : vector<1x256xf32> to vector<8x256xf32>
    %26 = arith.mulf %23, %25 : vector<8x256xf32>
    %cst_20 = arith.constant dense<0.000000e+00> : vector<8xf32>
    %27 = vector.multi_reduction <add>, %26, %cst_20 [1] : vector<8x256xf32> to vector<8xf32>
    %28 = vector.shape_cast %27 : vector<8xf32> to vector<8x1xf32>
    %c0_21 = arith.constant 0 : index
    %c0_22 = arith.constant 0 : index
    %29 = vector.load %arg9[%c0_21, %c0_22] : memref<1x1xf32, #tpu.memory_space<vmem>>, vector<1x1xf32>
    %30 = vector.broadcast %29 : vector<1x1xf32> to vector<8x1xf32>
    %31 = arith.addf %28, %30 : vector<8x1xf32>
    %c0_23 = arith.constant 0 : index
    %c0_24 = arith.constant 0 : index
    %32 = vector.load %arg10[%c0_23, %c0_24] : memref<8x1xf32, #tpu.memory_space<vmem>>, vector<8x1xf32>
    tpu.vector_store %arg10[%c0_23, %c0_24], %31 {strides = array<i32>} : memref<8x1xf32, #tpu.memory_space<vmem>>, vector<8x1xf32>,
    return
  }
  func.func @transform_0(%arg0: i32) -> (i32, i32) {
    %c0_i32 = arith.constant 0 : i32
    %c0_i32_0 = arith.constant 0 : i32
    return %arg0, %c0_i32 : i32, i32
  }
  func.func @transform_1(%arg0: i32) -> (i32, i32) {
    %c0_i32 = arith.constant 0 : i32
    %c0_i32_0 = arith.constant 0 : i32
    %c0_i32_1 = arith.constant 0 : i32
    return %c0_i32, %c0_i32_0 : i32, i32
  }
  func.func @transform_2(%arg0: i32) -> (i32, i32) {
    %c0_i32 = arith.constant 0 : i32
    %c0_i32_0 = arith.constant 0 : i32
    %c0_i32_1 = arith.constant 0 : i32
    return %c0_i32, %c0_i32_0 : i32, i32
  }
  func.func @transform_3(%arg0: i32) -> (i32, i32) {
    %c0_i32 = arith.constant 0 : i32
    %c0_i32_0 = arith.constant 0 : i32
    %c0_i32_1 = arith.constant 0 : i32
    return %c0_i32, %c0_i32_0 : i32, i32
  }
  func.func @transform_4(%arg0: i32) -> (i32, i32) {
    %c0_i32 = arith.constant 0 : i32
    %c0_i32_0 = arith.constant 0 : i32
    %c0_i32_1 = arith.constant 0 : i32
    return %c0_i32, %c0_i32_0 : i32, i32
  }
  func.func @transform_5(%arg0: i32) -> (i32, i32) {
    %c0_i32 = arith.constant 0 : i32
    %c0_i32_0 = arith.constant 0 : i32
    %c0_i32_1 = arith.constant 0 : i32
    return %c0_i32, %c0_i32_0 : i32, i32
  }
  func.func @transform_6(%arg0: i32) -> (i32, i32) {
    %c0_i32 = arith.constant 0 : i32
    %c0_i32_0 = arith.constant 0 : i32
    %c0_i32_1 = arith.constant 0 : i32
    return %c0_i32, %c0_i32_0 : i32, i32
  }
  func.func @transform_7(%arg0: i32) -> (i32, i32) {
    %c0_i32 = arith.constant 0 : i32
    %c0_i32_0 = arith.constant 0 : i32
    %c0_i32_1 = arith.constant 0 : i32
    return %c0_i32, %c0_i32_0 : i32, i32
  }
  func.func @transform_8(%arg0: i32) -> (i32, i32) {
    %c0_i32 = arith.constant 0 : i32
    %c0_i32_0 = arith.constant 0 : i32
    %c0_i32_1 = arith.constant 0 : i32
    return %c0_i32, %c0_i32_0 : i32, i32
  }
  func.func @transform_9(%arg0: i32) -> (i32, i32) {
    %c0_i32 = arith.constant 0 : i32
    %c0_i32_0 = arith.constant 0 : i32
    return %arg0, %c0_i32 : i32, i32
  }
}

</mosaic_0001>

<bundles_post_ra>
// kernel: tpu_custom_call.1
= control target key start
LH: loop header
LB: loop body
LE: loop exit
PB: predicated region body
PF: predicated region fallthrough
CT: control target
= control target key end

     0   :  { %s949_s0 = inlined_call_operand.hbm [shape: bf16[8,16], index: 0, kind: input, shape index: {}]   ;;  %s950_s1 = inlined_call_operand.hbm [shape: bf16[16,128], index: 1, kind: input, shape index: {}]   ;;  %s951_s2 = inlined_call_operand.vmem [shape: f32[1,128], index: 2, kind: input, shape index: {}]   ;;  %s952_s3 = inlined_call_operand.hbm [shape: bf16[128,256], index: 3, kind: input, shape index: {}]   ;;  %s953_s4 = inlined_call_operand.vmem [shape: f32[1,256], index: 4, kind: input, shape index: {}]   ;;  %s954_s5 = inlined_call_operand.hbm [shape: bf16[256,256], index: 5, kind: input, shape index: {}]   ;;  %s955_s6 = inlined_call_operand.vmem [shape: f32[1,256], index: 6, kind: input, shape index: {}]   ;;  %s956_s7 = inlined_call_operand.vmem [shape: f32[1,256], index: 7, kind: input, shape index: {}]   ;;  %s957_s8 = inlined_call_operand.<no memory space> [shape: f32[1,1], index: 8, kind: input, shape index: {}]   ;;  %s958_s9 = inlined_call_operand.vmem [shape: f32[8,1], index: 9, kind: output, shape index: {}]  }
   0x1   :  { %v14_v0 = vstv %s957_s8 }
   0x2   :  { %15 = vst [vmem:[#allocation2] sm:$0x1] %v14_v0 }
   0x3   :  { %16 = vsyncpa [#allocation4], 0 }
   0x4   :  { %17 = vsyncpa [#allocation6], 0 }
   0x5   :  { %18 = vsyncpa [#allocation9], 0  ;;  %s822_s11 = smov [#allocation5]   ;;  %s728_s15 = scalar_lea.hbm %s950_s1, 128 }
   0x6   :  { %s34_s12 = sshll.u32 %s822_s11, 4  ;;  %p729_p0 = scmp.ne.s32.totalorder %s950_s1, %s728_s15  ;;  %s35_s12 = int_to_ptr.vmem [resolvable:$true] %s34_s12 }
   0x7   :  { %p732_p1 = scmp.lt.u32.totalorder %s728_s15, %s950_s1 }
   0x9   :  { %p734_p2 = pnand %p732_p1, %p729_p0 }
   0xb   :  { %737 = shalt.err (!%p734_p2)
}
   0xc   :  { %s738_s8 = scalar_lea.vmem %s35_s12, 128  ;;  %p743_p4 = scmp.lt.s32.totalorder %s35_s12, %s35_s12 }
   0xd   :  { %p739_p3 = scmp.ne.s32.totalorder %s35_s12, %s738_s8  ;;  %p744_p5 = scmp.lt.s32.totalorder %s738_s8, %s738_s8 }
   0xf   :  { %p745_p6 = por %p744_p5, %p743_p4 }
  0x11   :  { %p746_p7 = pnand %p745_p6, %p739_p3 }
  0x13   :  { %749 = shalt.err (!%p746_p7)
}
  0x14   :  { %s823_s20 = smov 64   ;;  %s824_s21 = smov 4  }
  0x15   :  { %40 = dma.hbm_to_vmem [thread:$0]  %s950_s1, 128, %s35_s12, [#allocation6], %s823_s20, %s823_s20, %s824_s21  }
  0x16   :  { %s825_s24 = smov [#allocation3]   ;;  %s826_s26 = smov [#allocation7]  }
  0x17   :  { %s25_s25 = sshll.u32 %s825_s24, 4  ;;  %s48_s27 = sshll.u32 %s826_s26, 4  ;;  %s26_s25 = int_to_ptr.vmem [resolvable:$true] %s25_s25  ;;  %s49_s27 = int_to_ptr.vmem [resolvable:$true] %s48_s27 }
  0x18   :  { %s750_s30 = scalar_lea.hbm %s949_s0, 64 }
  0x19   :  { %p751_p8 = scmp.ne.s32.totalorder %s949_s0, %s750_s30  ;;  %p754_p9 = scmp.lt.u32.totalorder %s750_s30, %s949_s0 }
  0x1b   :  { %p756_p10 = pnand %p754_p9, %p751_p8 }
  0x1d   :  { %759 = shalt.err (!%p756_p10)
}
  0x1e   :  { %s760_s1 = scalar_lea.vmem %s26_s25, 64  ;;  %p765_p12 = scmp.lt.s32.totalorder %s26_s25, %s26_s25 }
  0x1f   :  { %p761_p11 = scmp.ne.s32.totalorder %s26_s25, %s760_s1  ;;  %p766_p13 = scmp.lt.s32.totalorder %s760_s1, %s760_s1 }
  0x21   :  { %p767_p0 = por %p766_p13, %p765_p12 }
  0x23   :  { %p768_p1 = pnand %p767_p0, %p761_p11 }
  0x25   :  { %771 = shalt.err (!%p768_p1)
}
  0x26   :  { %28 = dma.hbm_to_vmem [thread:$0]  %s949_s0, 64, %s26_s25, [#allocation4]  }
  0x27   :  { %s772_s18 = scalar_lea.hbm %s952_s3, 2048 }
  0x28   :  { %p773_p2 = scmp.ne.s32.totalorder %s952_s3, %s772_s18  ;;  %p776_p3 = scmp.lt.u32.totalorder %s772_s18, %s952_s3 }
  0x2a   :  { %p778_p4 = pnand %p776_p3, %p773_p2 }
  0x2c   :  { %781 = shalt.err (!%p778_p4)
}
  0x2d   :  { %s782_s22 = scalar_lea.vmem %s49_s27, 2048  ;;  %p787_p6 = scmp.lt.s32.totalorder %s49_s27, %s49_s27 }
  0x2e   :  { %p783_p5 = scmp.ne.s32.totalorder %s49_s27, %s782_s22  ;;  %p788_p7 = scmp.lt.s32.totalorder %s782_s22, %s782_s22 }
  0x30   :  { %p789_p8 = por %p788_p7, %p787_p6 }
  0x32   :  { %p790_p9 = pnand %p789_p8, %p783_p5 }
  0x34   :  { %793 = shalt.err (!%p790_p9)
}
  0x35   :  { %s827_s0 = smov 128   ;;  %s828_s23 = smov 8  }
  0x36   :  { %54 = dma.hbm_to_vmem [thread:$0]  %s952_s3, 2048, %s49_s27, [#allocation6], %s827_s0, %s827_s0, %s828_s23  }
  0x37   :  { %s829_s26 = smov [#allocation8]   ;;  %s794_s10 = scalar_lea.hbm %s954_s5, 4096 }
  0x38   :  { %s62_s28 = sshll.u32 %s829_s26, 4  ;;  %p795_p10 = scmp.ne.s32.totalorder %s954_s5, %s794_s10  ;;  %s63_s28 = int_to_ptr.vmem [resolvable:$true] %s62_s28 }
  0x39   :  { %p798_p11 = scmp.lt.u32.totalorder %s794_s10, %s954_s5 }
  0x3b   :  { %p800_p12 = pnand %p798_p11, %p795_p10 }
  0x3d   :  { %803 = shalt.err (!%p800_p12)
}
  0x3e   :  { %s804_s12 = scalar_lea.vmem %s63_s28, 4096  ;;  %p809_p0 = scmp.lt.s32.totalorder %s63_s28, %s63_s28 }
  0x3f   :  { %p805_p13 = scmp.ne.s32.totalorder %s63_s28, %s804_s12  ;;  %p810_p1 = scmp.lt.s32.totalorder %s804_s12, %s804_s12 }
  0x41   :  { %p811_p2 = por %p810_p1, %p809_p0 }
  0x43   :  { %p812_p3 = pnand %p811_p2, %p805_p13 }
  0x45   :  { %815 = shalt.err (!%p812_p3)
}
  0x46   :  { %68 = dma.hbm_to_vmem [thread:$0]  %s954_s5, 4096, %s63_s28, [#allocation9], %s827_s0, %s827_s0, %s828_s23  }
  0x47   :  { %816 = dma.done.wait [#allocation4], 64  }
  0x48   :  { %817 = vsyncadd [#allocation4], 4294967232 }
  0x49   :  { %818 = dma.done.wait [#allocation6], 2176  }
  0x4a   :  { %819 = vsyncadd [#allocation6], 4294965120 }
  0x4b   :  { %820 = dma.done.wait [#allocation9], 4096  }
  0x4c   :  { %821 = vsyncadd [#allocation9], 4294963200  ;;  %v830_v1 = vmov 0.0   ;;  %vm831_vm0 = vmmov 0   ;;  %v655_v2 = vld [vmem:[#allocation5] sm:$0xff]   ;;  %vm104_vm1 = vcmask 130048   ;;  %v168_v61 = vlaneseq }
  0x4d   :  { %638 = vmatprep.subr.bf16.mxu1 %v830_v1  ;;  %640 = vmatprep.mubr.msk.bf16.mxu1 %vm831_vm0, %v830_v1  ;;  %v88_v3 = vld [vmem:[#allocation3] sm:$0xf]  ;;  %v656_v4 = vld [vmem:[#allocation7] ss:$8 sps:$4 sm:$0xff]   ;;  %v658_v5 = vld [vmem:[#allocation7 + $0x4] ss:$8 sps:$4 sm:$0xff]  }
  0x4e   :  { %639 = vmatpush3.bf16.msra.mxu1 %v655_v2  ;;  %v661_v6 = vld [vmem:[#allocation7 + $0x14] ss:$8 sps:$4 sm:$0xff]   ;;  %v659_v7 = vld [vmem:[#allocation7 + $0x10] ss:$8 sps:$4 sm:$0xff]   ;;  %v664_v8 = vld [vmem:[#allocation7 + $0x24] ss:$8 sps:$4 sm:$0xff]  }
  0x4f   :  { %258 = vmatprep.subr.bf16.mxu1 %v658_v5  ;;  %v662_v9 = vld [vmem:[#allocation7 + $0x20] ss:$8 sps:$4 sm:$0xff]   ;;  %v667_v10 = vld [vmem:[#allocation7 + $0x34] ss:$8 sps:$4 sm:$0xff]   ;;  %v665_v11 = vld [vmem:[#allocation7 + $0x30] ss:$8 sps:$4 sm:$0xff]  }
  0x50   :  { %v670_v12 = vld [vmem:[#allocation7 + $0x44] ss:$8 sps:$4 sm:$0xff]   ;;  %v668_v13 = vld [vmem:[#allocation7 + $0x40] ss:$8 sps:$4 sm:$0xff]   ;;  %v673_v14 = vld [vmem:[#allocation7 + $0x54] ss:$8 sps:$4 sm:$0xff]  }
  0x51   :  { %641 = vmatmul.mubr.msk.bf16.vlgmr.msra.gmra.mrb[0].mxu1 %vm104_vm1, %v88_v3  ;;  %v671_v15 = vld [vmem:[#allocation7 + $0x50] ss:$8 sps:$4 sm:$0xff]   ;;  %v676_v16 = vld [vmem:[#allocation7 + $0x64] ss:$8 sps:$4 sm:$0xff]   ;;  %v674_v17 = vld [vmem:[#allocation7 + $0x60] ss:$8 sps:$4 sm:$0xff]  }
  0x52   :  { %259 = vmatpush1.bf16.msra.mxu1 %v656_v4  ;;  %v679_v18 = vld [vmem:[#allocation7 + $0x74] ss:$8 sps:$4 sm:$0xff]   ;;  %v677_v19 = vld [vmem:[#allocation7 + $0x70] ss:$8 sps:$4 sm:$0xff]   ;;  %v832_v20 = vmov 0   ;;  %v169_v62 = vshrl.u32 %v168_v61, 7 }
  0x53   :  { %260 = vmatprep.subr.bf16.mxu1 %v661_v6  ;;  %290 = vmatprep.mubr.bf16.mxu1 %v832_v20  ;;  %v680_v21 = vld [vmem:[#allocation8 + $0x4] ss:$8 sps:$4 sm:$0xff]   ;;  %v682_v22 = vld [vmem:[#allocation8] ss:$8 sps:$4 sm:$0xff]   ;;  %v683_v23 = vld [vmem:[#allocation8 + $0x14] ss:$8 sps:$4 sm:$0xff]  }
  0x54   :  { %507 = vmatprep.subr.bf16.mxu0 %v680_v21  ;;  %v685_v24 = vld [vmem:[#allocation8 + $0x10] ss:$8 sps:$4 sm:$0xff]   ;;  %v686_v25 = vld [vmem:[#allocation8 + $0x24] ss:$8 sps:$4 sm:$0xff]   ;;  %v688_v26 = vld [vmem:[#allocation8 + $0x20] ss:$8 sps:$4 sm:$0xff]  }
  0x55   :  { %508 = vmatpush1.bf16.msra.mxu0 %v682_v22  ;;  %v689_v27 = vld [vmem:[#allocation8 + $0x34] ss:$8 sps:$4 sm:$0xff]   ;;  %v691_v28 = vld [vmem:[#allocation8 + $0x30] ss:$8 sps:$4 sm:$0xff]   ;;  %v692_v29 = vld [vmem:[#allocation8 + $0x44] ss:$8 sps:$4 sm:$0xff]  }
  0x56   :  { %261 = vmatpush1.bf16.msra.mxu1 %v659_v7  ;;  %509 = vmatprep.subr.bf16.mxu0 %v683_v23  ;;  %v694_v30 = vld [vmem:[#allocation8 + $0x40] ss:$8 sps:$4 sm:$0xff]   ;;  %v695_v31 = vld [vmem:[#allocation8 + $0x54] ss:$8 sps:$4 sm:$0xff]   ;;  %v697_v32 = vld [vmem:[#allocation8 + $0x50] ss:$8 sps:$4 sm:$0xff]  }
  0x57   :  { %262 = vmatprep.subr.bf16.mxu1 %v664_v8  ;;  %v698_v33 = vld [vmem:[#allocation8 + $0x64] ss:$8 sps:$4 sm:$0xff]   ;;  %v700_v34 = vld [vmem:[#allocation8 + $0x60] ss:$8 sps:$4 sm:$0xff]   ;;  %v701_v35 = vld [vmem:[#allocation8 + $0x74] ss:$8 sps:$4 sm:$0xff]  }
  0x58   :  { %v703_v36 = vld [vmem:[#allocation8 + $0x70] ss:$8 sps:$4 sm:$0xff]   ;;  %v704_v37 = vld [vmem:[#allocation8 + $0x84] ss:$8 sps:$4 sm:$0xff]   ;;  %v706_v38 = vld [vmem:[#allocation8 + $0x80] ss:$8 sps:$4 sm:$0xff]  }
  0x59   :  { %510 = vmatpush1.bf16.msra.mxu0 %v685_v24  ;;  %v707_v39 = vld [vmem:[#allocation8 + $0x94] ss:$8 sps:$4 sm:$0xff]   ;;  %v709_v40 = vld [vmem:[#allocation8 + $0x90] ss:$8 sps:$4 sm:$0xff]   ;;  %v710_v41 = vld [vmem:[#allocation8 + $0xa4] ss:$8 sps:$4 sm:$0xff]  }
  0x5a   :  { %263 = vmatpush1.bf16.msra.mxu1 %v662_v9  ;;  %511 = vmatprep.subr.bf16.mxu0 %v686_v25  ;;  %v712_v42 = vld [vmem:[#allocation8 + $0xa0] ss:$8 sps:$4 sm:$0xff]   ;;  %v713_v43 = vld [vmem:[#allocation8 + $0xb4] ss:$8 sps:$4 sm:$0xff]   ;;  %v715_v44 = vld [vmem:[#allocation8 + $0xb0] ss:$8 sps:$4 sm:$0xff]  }
  0x5b   :  { %264 = vmatprep.subr.bf16.mxu1 %v667_v10  ;;  %v716_v45 = vld [vmem:[#allocation8 + $0xc4] ss:$8 sps:$4 sm:$0xff]   ;;  %v718_v46 = vld [vmem:[#allocation8 + $0xc0] ss:$8 sps:$4 sm:$0xff]   ;;  %v719_v47 = vld [vmem:[#allocation8 + $0xd4] ss:$8 sps:$4 sm:$0xff]  }
  0x5c   :  { %v721_v48 = vld [vmem:[#allocation8 + $0xd0] ss:$8 sps:$4 sm:$0xff]   ;;  %v722_v57 = vld [vmem:[#allocation8 + $0xe4] ss:$8 sps:$4 sm:$0xff]   ;;  %v724_v58 = vld [vmem:[#allocation8 + $0xe0] ss:$8 sps:$4 sm:$0xff]  }
  0x5d   :  { %512 = vmatpush1.bf16.msra.mxu0 %v688_v26  ;;  %v584_v49 = vld [vmem:[%s951_s2] ss:$0 sm:$0xff]  ;;  %v725_v59 = vld [vmem:[#allocation8 + $0xf4] ss:$8 sps:$4 sm:$0xff]   ;;  %v170_v63 = vsub.s32 0, %v169_v62  ;;  %v174_v1 = vsub.s32 1, %v169_v62 }
  0x5e   :  { %265 = vmatpush1.bf16.msra.mxu1 %v665_v11  ;;  %513 = vmatprep.subr.bf16.mxu0 %v689_v27  ;;  %v727_v60 = vld [vmem:[#allocation8 + $0xf0] ss:$8 sps:$4 sm:$0xff]   ;;  %vm575_vm2 = vcmask 7168  }
  0x5f   :  { %266 = vmatprep.subr.bf16.mxu1 %v670_v12  ;;  %v166_v0 = vld [vmem:[%s953_s4] sm:$0x3] }
  0x60   :  { %v171_v2 = vrot.slane %v166_v0, %v170_v63  ;;  %v175_v3 = vrot.slane %v166_v0, %v174_v1 }
  0x61   :  { %514 = vmatpush1.bf16.msra.mxu0 %v691_v28 }
  0x62   :  { %267 = vmatpush1.bf16.msra.mxu1 %v668_v13  ;;  %515 = vmatprep.subr.bf16.mxu0 %v692_v29 }
  0x63   :  { %268 = vmatprep.subr.bf16.mxu1 %v673_v14  ;;  %v335_v14 = vld [vmem:[%s955_s6] sm:$0x3] }
  0x65   :  { %516 = vmatpush1.bf16.msra.mxu0 %v694_v30 }
  0x66   :  { %269 = vmatpush1.bf16.msra.mxu1 %v671_v15  ;;  %517 = vmatprep.subr.bf16.mxu0 %v695_v31  ;;  %v340_v15 = vrot.slane %v335_v14, %v170_v63  ;;  %v635_v31 = vld [vmem:[#allocation2] ss:$0 sm:$0xff] }
  0x67   :  { %270 = vmatprep.subr.bf16.mxu1 %v676_v16  ;;  %v344_v16 = vrot.slane %v335_v14, %v174_v1 }
  0x69   :  { %518 = vmatpush1.bf16.msra.mxu0 %v697_v32 }
  0x6a   :  { %271 = vmatpush1.bf16.msra.mxu1 %v674_v17  ;;  %519 = vmatprep.subr.bf16.mxu0 %v698_v33  ;;  %v550_v17 = vld [vmem:[%s956_s7] sm:$0x3] }
  0x6b   :  { %272 = vmatprep.subr.bf16.mxu1 %v679_v18  ;;  %v555_v21 = vrot.slane %v550_v17, %v170_v63  ;;  %v559_v24 = vrot.slane %v550_v17, %v174_v1 }
  0x6d   :  { %520 = vmatpush1.bf16.msra.mxu0 %v700_v34 }
  0x6e   :  { %273 = vmatpush1.bf16.msra.mxu1 %v677_v19  ;;  %521 = vmatprep.subr.bf16.mxu0 %v701_v35 }
  0x71   :  { %522 = vmatpush1.bf16.msra.mxu0 %v703_v36 }
  0x72   :  { %523 = vmatprep.subr.bf16.mxu0 %v704_v37 }
  0x75   :  { %524 = vmatpush1.bf16.msra.mxu0 %v706_v38 }
  0x76   :  { %525 = vmatprep.subr.bf16.mxu0 %v707_v39 }
  0x79   :  { %526 = vmatpush1.bf16.msra.mxu0 %v709_v40 }
  0x7a   :  { %527 = vmatprep.subr.bf16.mxu0 %v710_v41 }
  0x7d   :  { %528 = vmatpush1.bf16.msra.mxu0 %v712_v42 }
  0x7e   :  { %529 = vmatprep.subr.bf16.mxu0 %v713_v43 }
  0x81   :  { %530 = vmatpush1.bf16.msra.mxu0 %v715_v44 }
  0x82   :  { %531 = vmatprep.subr.bf16.mxu0 %v716_v45 }
  0x85   :  { %532 = vmatpush1.bf16.msra.mxu0 %v718_v46 }
  0x86   :  { %533 = vmatprep.subr.bf16.mxu0 %v719_v47 }
  0x89   :  { %534 = vmatpush1.bf16.msra.mxu0 %v721_v48 }
  0x8a   :  { %535 = vmatprep.subr.bf16.mxu0 %v722_v57 }
  0x8d   :  { %536 = vmatpush1.bf16.msra.mxu0 %v724_v58 }
  0x8e   :  { %537 = vmatprep.subr.bf16.mxu0 %v725_v59 }
  0x91   :  { %538 = vmatpush1.bf16.msra.mxu0 %v727_v60 }
 0x124   :  { %v142_v50 = vpop.f32.mrb[0].mxu1 }
 0x125   :  { %v143_v51 = vadd.f32 %v584_v49, %v142_v50  ;;  %v642_v52 = vpop.f32.mrb[1].mxu1 }
 0x126   :  { %v145_v53 = vpop.f32.mrb[2].mxu1 }
 0x127   :  { %v148_v54 = vmax.f32 %v143_v51, 0.0  ;;  %v643_v55 = vpop.f32.mrb[3].mxu1 }
 0x129   :  { %v149_v56 = vpack.c.bf16 %v148_v54, %v148_v54 }
 0x12b   :  { %291 = vmatmul.mubr.bf16.vlgmr.msra.gmra.mrb[4].mxu1 %v149_v56 }
 0x1fe   :  { %v292_v4 = vpop.f32.mrb[4].mxu1 }
 0x1ff   :  { %v293_v5 = vadd.f32 %v292_v4, %v171_v2  ;;  %v294_v6 = vpop.f32.mrb[5].mxu1 }
 0x200   :  { %v295_v7 = vadd.f32 %v294_v6, %v175_v3  ;;  %v296_v8 = vpop.f32.mrb[6].mxu1 }
 0x201   :  { %v299_v9 = vmax.f32 %v293_v5, 0.0  ;;  %v297_v10 = vpop.f32.mrb[7].mxu1 }
 0x202   :  { %v300_v11 = vmax.f32 %v295_v7, 0.0 }
 0x203   :  { %v301_v13 = vpack.c.bf16 %v299_v9, %v299_v9 }
 0x204   :  { %v302_v12 = vpack.c.bf16 %v300_v11, %v300_v11 }
 0x206   :  { %539 = vmatprep.mubr.bf16.mxu0 %v302_v12 }
 0x207   :  { %540 = vmatmul.mubr.bf16.vlgmr.msra.gmra.mrb[0].mxu0 %v301_v13 }
 0x2da   :  { %v541_v18 = vpop.f32.mrb[0].mxu0 }
 0x2db   :  { %v542_v19 = vadd.f32 %v541_v18, %v340_v15  ;;  %v543_v20 = vpop.f32.mrb[1].mxu0 }
 0x2dc   :  { %v544_v22 = vadd.f32 %v543_v20, %v344_v16  ;;  %v545_v23 = vpop.f32.mrb[2].mxu0 }
 0x2dd   :  { %v548_v25 = vmax.f32 %v542_v19, 0.0  ;;  %v546_v26 = vpop.f32.mrb[3].mxu0 }
 0x2de   :  { %v549_v27 = vmax.f32 %v544_v22, 0.0 }
 0x2df   :  { %v562_v28 = vmul.f32 %v555_v21, %v548_v25 }
 0x2e0   :  { %v563_v29 = vmul.f32 %v559_v24, %v549_v27 }
 0x2e2   :  { %v564_v30 = vadd.f32 %v563_v29, %v562_v28 }
 0x2e4   :  { %565 = vadd.xlane.f32.xlu0 %v564_v30 }
 0x371   :  { %v566_v32 = vpop.xlane.xlu0 %565 }
 0x372   :  { %v574_v33 = vadd.f32 %v635_v31, %v566_v32 }
 0x374   :  { %576 = vst.msk [vmem:[%s958_s9] sm:$0xff] %vm575_vm2, %v574_v33 }
 0x375   :  { %581 = vsyncpa [#allocation4], 1 }
 0x376   :  { %582 = vsyncpa [#allocation6], 1 }
 0x377   :  { %583 = vsyncpa [#allocation9], 1 }

</bundles_post_ra>
